<compile_context>
chip_gen: v6e
topology: v6e:2x2x1
jax: 0.10.0
libtpu: 0.0.40
codegen_flags: <defaults>
</compile_context>

<pallas_src>
import math
import functools

import jax
import jax.numpy as jnp
from jax import lax
from jax.experimental import pallas as pl
from jax.experimental.pallas import tpu as pltpu

_BF16 = jnp.bfloat16


# ---------------------------------------------------------------------------
# Tiling helpers
# ---------------------------------------------------------------------------
def _divisor_tiles(n, candidates):
    """All candidates that divide n (descending); falls back to [n]."""
    tiles = [c for c in candidates if c <= n and n % c == 0]
    return tiles if tiles else [n]


def _vmem_budget_bytes():
    """Per-generation VMEM budget for tile sizing / vmem_limit_bytes.

    v5e/v6e (128 MiB physical) -> 96 MiB; v7x (64 MiB physical) -> 48 MiB.
    Falls back to the conservative 48 MiB if the query is unavailable.
    """
    cap = 64 * 1024 * 1024
    try:
        cap = int(pltpu.get_tpu_info().vmem_capacity_bytes)
    except Exception:
        pass
    return min(96 * 1024 * 1024, (cap * 3) // 4)


# ---------------------------------------------------------------------------
# Flash-style attention, packed-heads variant (d_head < 128).
#   grid = (B, Sq // tq, Skv // tkv)      (kv axis last, "arbitrary")
#   q block (1, tq, D), k/v block (1, tkv, D), out block (1, tq, D).
# Heads are static lane windows of width d_head inside the kernel, so no
# head split/merge transpose ever touches HBM.
# ---------------------------------------------------------------------------
def _flash_packed_kernel(q_ref, k_ref, v_ref, o_ref,
                         q_sc, m_sc, l_sc, acc_sc, *,
                         n_heads, d_head, scale):
    kv_idx = pl.program_id(2)

    @pl.when(kv_idx == 0)
    def _init():
        # Stage scaled Q once per (b, q-tile): removes per-head per-kv-step
        # slice + cast + scale from the steady-state loop.
        q_sc[...] = (q_ref[0].astype(jnp.float32) * scale).astype(_BF16)
        m_sc[...] = jnp.full_like(m_sc, -jnp.inf)
        l_sc[...] = jnp.zeros_like(l_sc)
        acc_sc[...] = jnp.zeros_like(acc_sc)

    k_all = k_ref[0]                                   # (tkv, D) bf16
    v_all = v_ref[0]                                   # (tkv, D) bf16

    for h in range(n_heads):
        lo, hi = h * d_head, (h + 1) * d_head
        q_h = q_sc[:, lo:hi]                           # (tq,  Dh) bf16, scaled
        k_h = k_all[:, lo:hi]                          # (tkv, Dh) bf16
        v_h = v_all[:, lo:hi]                          # (tkv, Dh) bf16

        # scores (tq, tkv): contract d_head directly (no K^T materialized).
        s = lax.dot_general(q_h, k_h,
                            dimension_numbers=(((1,), (1,)), ((), ())),
                            preferred_element_type=jnp.float32)

        m_prev = m_sc[h]                               # (tq, 128) broadcast
        m_curr = jnp.max(s, axis=-1, keepdims=True)    # (tq, 1)
        m_next = jnp.maximum(m_prev, m_curr)           # (tq, 128)
        alpha = jnp.exp(m_prev - m_next)               # (tq, 128)
        p = jnp.exp(s - m_next[:, :1])                 # (tq, tkv)

        l_sc[h] = alpha * l_sc[h] + jnp.sum(p, axis=-1, keepdims=True)
        acc_sc[h] = alpha[:, :1] * acc_sc[h] + jnp.dot(
            p.astype(_BF16), v_h, preferred_element_type=jnp.float32)
        m_sc[h] = m_next

    @pl.when(kv_idx == pl.num_programs(2) - 1)
    def _finalize():
        for h in range(n_heads):
            lo, hi = h * d_head, (h + 1) * d_head
            l_h = l_sc[h][:, :1]
            o_h = acc_sc[h] * pl.reciprocal(l_h, approx=False)
            o_ref[0, :, lo:hi] = o_h.astype(o_ref.dtype)


# ---------------------------------------------------------------------------
# Flash-style attention, head-axis variant (d_head multiple of 128).
#   grid = (B, H, Sq // tq, Skv // tkv)   (kv axis last, "arbitrary")
#   Each block is a lane-dense (1, tile, d_head) window; heads are split
#   across the "parallel" head axis (megacore-friendly), scratch is small.
# ---------------------------------------------------------------------------
def _flash_head_axis_kernel(q_ref, k_ref, v_ref, o_ref,
                            q_sc, m_sc, l_sc, acc_sc, *, scale):
    kv_idx = pl.program_id(3)

    @pl.when(kv_idx == 0)
    def _init():
        q_sc[...] = (q_ref[0].astype(jnp.float32) * scale).astype(_BF16)
        m_sc[...] = jnp.full_like(m_sc, -jnp.inf)
        l_sc[...] = jnp.zeros_like(l_sc)
        acc_sc[...] = jnp.zeros_like(acc_sc)

    k_h = k_ref[0]                                     # (tkv, Dh) bf16
    v_h = v_ref[0]                                     # (tkv, Dh) bf16

    s = lax.dot_general(q_sc[...], k_h,
                        dimension_numbers=(((1,), (1,)), ((), ())),
                        preferred_element_type=jnp.float32)

    m_prev = m_sc[...]                                 # (tq, 128)
    m_curr = jnp.max(s, axis=-1, keepdims=True)        # (tq, 1)
    m_next = jnp.maximum(m_prev, m_curr)
    alpha = jnp.exp(m_prev - m_next)
    p = jnp.exp(s - m_next[:, :1])                     # (tq, tkv)

    l_sc[...] = alpha * l_sc[...] + jnp.sum(p, axis=-1, keepdims=True)
    acc_sc[...] = alpha[:, :1] * acc_sc[...] + jnp.dot(
        p.astype(_BF16), v_h, preferred_element_type=jnp.float32)
    m_sc[...] = m_next

    @pl.when(kv_idx == pl.num_programs(3) - 1)
    def _finalize():
        l_h = l_sc[...][:, :1]
        o_ref[0] = (acc_sc[...] * pl.reciprocal(l_h, approx=False)).astype(o_ref.dtype)


def _flash_attention(q, k, v, n_heads, d_head):
    B, Sq, D = q.shape
    Skv = k.shape[1]
    scale = 1.0 / math.sqrt(d_head)

    # bf16 inputs halve attention DMA bytes (K/V are re-streamed Sq/tq times);
    # the MXU is natively bf16 on v5e/v6e/v7x.  Accumulation stays f32.
    q = q.astype(_BF16)
    k = k.astype(_BF16)
    v = v.astype(_BF16)

    budget = _vmem_budget_bytes()
    usable = int(budget * 0.8)
    in_item = 2    # bf16
    out_item = 2   # bf16 intermediate

    use_head_axis = (d_head % 128 == 0)
    lanes = d_head if use_head_axis else D
    heads_in_scratch = 1 if use_head_axis else n_heads

    def working_set(tq, tkv):
        blocks = 2 * (tq * lanes * in_item            # q (double-buffered)
                      + 2 * tkv * lanes * in_item     # k, v
                      + tq * lanes * out_item)        # o
        scratch = (heads_in_scratch * tq * d_head * 4        # acc (f32)
                   + 2 * heads_in_scratch * tq * 128 * 4     # m, l (f32)
                   + tq * lanes * 2)                          # staged q (bf16)
        return blocks + scratch

    tq_list = _divisor_tiles(Sq, (256, 128, 64, 32, 16, 8))
    tkv_list = _divisor_tiles(Skv, (512, 256, 128, 64, 32, 16, 8))
    pairs = sorted(((a, b) for a in tq_list for b in tkv_list),
                   key=lambda p: (p[0] * p[1], p[0]), reverse=True)
    tq, tkv = tq_list[-1], tkv_list[-1]
    for a, b in pairs:
        if working_set(a, b) <= usable:
            tq, tkv = a, b
            break

    cost = pl.CostEstimate(
        flops=4 * B * Sq * Skv * D,
        transcendentals=B * n_heads * Sq * Skv,
        # Includes K/V re-streaming: they are read once per q-tile.
        bytes_accessed=(in_item * B * Sq * D + out_item * B * Sq * D
                        + (Sq // tq) * in_item * 2 * B * Skv * D))

    if use_head_axis:
        kernel = functools.partial(_flash_head_axis_kernel, scale=scale)
        grid = (B, n_heads, Sq // tq, Skv // tkv)
        in_specs = [
            pl.BlockSpec((1, tq, d_head), lambda b, h, qi, ki: (b, qi, h)),
            pl.BlockSpec((1, tkv, d_head), lambda b, h, qi, ki: (b, ki, h)),
            pl.BlockSpec((1, tkv, d_head), lambda b, h, qi, ki: (b, ki, h)),
        ]
        out_specs = pl.BlockSpec((1, tq, d_head),
                                 lambda b, h, qi, ki: (b, qi, h))
        scratch_shapes = [
            pltpu.VMEM((tq, d_head), _BF16),            # staged scaled q
            pltpu.VMEM((tq, 128), jnp.float32),         # running max
            pltpu.VMEM((tq, 128), jnp.float32),         # running sum
            pltpu.VMEM((tq, d_head), jnp.float32),      # accumulator
        ]
        dims = ("parallel", "parallel", "parallel", "arbitrary")
    else:
        kernel = functools.partial(_flash_packed_kernel, n_heads=n_heads,
                                   d_head=d_head, scale=scale)
        grid = (B, Sq // tq, Skv // tkv)
        in_specs = [
            pl.BlockSpec((1, tq, D), lambda b, qi, ki: (b, qi, 0)),
            pl.BlockSpec((1, tkv, D), lambda b, qi, ki: (b, ki, 0)),
            pl.BlockSpec((1, tkv, D), lambda b, qi, ki: (b, ki, 0)),
        ]
        out_specs = pl.BlockSpec((1, tq, D), lambda b, qi, ki: (b, qi, 0))
        scratch_shapes = [
            pltpu.VMEM((tq, D), _BF16),                         # staged scaled q
            pltpu.VMEM((n_heads, tq, 128), jnp.float32),        # running max
            pltpu.VMEM((n_heads, tq, 128), jnp.float32),        # running sum
            pltpu.VMEM((n_heads, tq, d_head), jnp.float32),     # accumulator
        ]
        dims = ("parallel", "parallel", "arbitrary")

    return pl.pallas_call(
        kernel,
        out_shape=jax.ShapeDtypeStruct((B, Sq, D), _BF16),
        grid_spec=pltpu.PrefetchScalarGridSpec(
            num_scalar_prefetch=0,
            grid=grid,
            in_specs=in_specs,
            out_specs=out_specs,
            scratch_shapes=scratch_shapes,
        ),
        compiler_params=pltpu.CompilerParams(
            dimension_semantics=dims,
            vmem_limit_bytes=budget),
        cost_estimate=cost,
    )(q, k, v)


# ---------------------------------------------------------------------------
# Output projection: tiled matmul y = x @ W0^T + b over flattened (B*S, D).
# x and W0^T are bf16 (f32 accumulation), output f32.
# ---------------------------------------------------------------------------
def _matmul_bias_kernel(x_ref, w_ref, b_ref, o_ref, acc_ref):
    kk = pl.program_id(2)

    @pl.when(kk == 0)
    def _init():
        acc_ref[...] = jnp.zeros_like(acc_ref)

    acc_ref[...] += jnp.dot(x_ref[...], w_ref[...],
                            preferred_element_type=jnp.float32)

    @pl.when(kk == pl.num_programs(2) - 1)
    def _finalize():
        o_ref[...] = (acc_ref[...] +
                      b_ref[...].astype(jnp.float32)).astype(o_ref.dtype)


def _linear(x, w_t, b, out_dtype=jnp.float32):
    # x: (M, K); w_t: (K, N) pre-transposed weight; b: (N,)
    M, K = x.shape
    N = w_t.shape[1]
    budget = _vmem_budget_bytes()
    usable = int(budget * 0.8)
    xi = jnp.dtype(x.dtype).itemsize
    wi = jnp.dtype(w_t.dtype).itemsize
    oi = jnp.dtype(out_dtype).itemsize

    tm_list = _divisor_tiles(M, (512, 256, 128, 64, 32, 16, 8))
    tn_list = _divisor_tiles(N, (512, 256, 128))
    tk_list = _divisor_tiles(K, (512, 256, 128))

    def working_set(tm, tn, tk):
        return (2 * (tm * tk * xi + tk * tn * wi + tm * tn * oi + tn * 4)
                + tm * tn * 4)

    tm, tn, tk = tm_list[-1], tn_list[-1], tk_list[-1]
    triples = sorted(((a, bb, c) for a in tm_list for bb in tn_list
                      for c in tk_list),
                     key=lambda t: (t[0] * t[1] * t[2], t[1], t[0]),
                     reverse=True)
    for a, bb, c in triples:
        if working_set(a, bb, c) <= usable:
            tm, tn, tk = a, bb, c
            break

    b2 = b.reshape(1, N).astype(jnp.float32)
    cost = pl.CostEstimate(
        flops=2 * M * N * K, transcendentals=0,
        bytes_accessed=((N // tn) * M * K * xi + (M // tm) * K * N * wi
                        + M * N * oi))
    return pl.pallas_call(
        _matmul_bias_kernel,
        out_shape=jax.ShapeDtypeStruct((M, N), out_dtype),
        grid_spec=pltpu.PrefetchScalarGridSpec(
            num_scalar_prefetch=0,
            grid=(M // tm, N // tn, K // tk),
            in_specs=[
                pl.BlockSpec((tm, tk), lambda i, j, kk: (i, kk)),
                pl.BlockSpec((tk, tn), lambda i, j, kk: (kk, j)),
                pl.BlockSpec((1, tn), lambda i, j, kk: (0, j)),
            ],
            out_specs=pl.BlockSpec((tm, tn), lambda i, j, kk: (i, j)),
            scratch_shapes=[pltpu.VMEM((tm, tn), jnp.float32)],
        ),
        compiler_params=pltpu.CompilerParams(
            dimension_semantics=("parallel", "parallel", "arbitrary"),
            vmem_limit_bytes=budget),
        cost_estimate=cost,
    )(x, w_t, b2)


# ---------------------------------------------------------------------------
# Module wrapper
# ---------------------------------------------------------------------------
class MultiHeadAttentionPallas:
    """Pallas TPU forward pass matching the PyTorch MultiHeadAttention module."""

    def __init__(self, d_model, n_heads, key):
        assert d_model % n_heads == 0
        self.d_model = d_model
        self.n_heads = n_heads
        self.d_head = d_model // n_heads
        # nn.Linear(d_model, d_model) default init: U(-1/sqrt(fan_in), +)
        k_w, k_b = jax.random.split(key)
        bound = 1.0 / math.sqrt(d_model)
        self.W0 = jax.random.uniform(
            k_w, (d_model, d_model), jnp.float32, -bound, bound)   # (out, in)
        self.b0 = jax.random.uniform(
            k_b, (d_model,), jnp.float32, -bound, bound)
        # Pre-transpose (and pre-cast to bf16 for the MXU) once.
        self.W0_T = jnp.asarray(self.W0.T, dtype=_BF16)            # (in, out)

    def __call__(self, q, k, v):
        B, Sq, D = q.shape
        o = _flash_attention(q, k, v, self.n_heads, self.d_head)   # bf16 (B,Sq,D)
        y = _linear(o.reshape(B * Sq, D), self.W0_T, self.b0,
                    out_dtype=jnp.float32)                          # (B*Sq, D) f32
        return y.reshape(B, Sq, D)


# ---------------------------------------------------------------------------
# Pure-JAX f32 reference
# ---------------------------------------------------------------------------
def _reference(q, k, v, W0, b0, n_heads):
    B, S, D = q.shape
    Dh = D // n_heads

    def split(x):
        return x.reshape(B, S, n_heads, Dh).transpose(0, 2, 1, 3)

    qh, kh, vh = split(q), split(k), split(v)
    s = jnp.einsum("bhqd,bhkd->bhqk", qh, kh) / math.sqrt(Dh)
    p = jax.nn.softmax(s, axis=-1)
    o = jnp.einsum("bhqk,bhkd->bhqd", p, vh)
    o = o.transpose(0, 2, 1, 3).reshape(B, S, D)
    return o @ W0.T + b0


if __name__ == "__main__":
    B, S, d_model, n_heads = 2, 8, 32, 4

    key = jax.random.PRNGKey(0)
    k_param, k_q, k_k, k_v = jax.random.split(key, 4)

    mha = MultiHeadAttentionPallas(d_model, n_heads, k_param)

    q = jax.random.normal(k_q, (B, S, d_model), jnp.float32)
    k = jax.random.normal(k_k, (B, S, d_model), jnp.float32)
    v = jax.random.normal(k_v, (B, S, d_model), jnp.float32)

    out = jax.block_until_ready(mha(q, k, v))

    ref = _reference(q, k, v, mha.W0, mha.b0, n_heads)
    assert out.shape == (B, S, d_model)
    # bf16 MXU inputs (f32 accumulation) => looser tolerance than pure-f32.
    assert jnp.allclose(out, ref, atol=5e-2, rtol=5e-2), "mismatch vs reference"

    print("KERNEL_OK")
</pallas_src>

<mosaic_0001>
module attributes {stable_mosaic.version = 11 : i64} {
  func.func @_flash_packed_kernel(%arg0: i32, %arg1: i32, %arg2: i32, %arg3: memref<1x8x32xbf16, #tpu.memory_space<vmem>>, %arg4: memref<1x8x32xbf16, #tpu.memory_space<vmem>>, %arg5: memref<1x8x32xbf16, #tpu.memory_space<vmem>>, %arg6: memref<1x8x32xbf16, #tpu.memory_space<vmem>>, %arg7: memref<8x32xbf16, #tpu.memory_space<vmem>>, %arg8: memref<4x8x128xf32, #tpu.memory_space<vmem>>, %arg9: memref<4x8x128xf32, #tpu.memory_space<vmem>>, %arg10: memref<4x8x8xf32, #tpu.memory_space<vmem>>) attributes {dimension_semantics = [#tpu.dimension_semantics<parallel>, #tpu.dimension_semantics<parallel>, #tpu.dimension_semantics<arbitrary>], iteration_bounds = array<i64: 2, 1, 1>, scalar_prefetch = 0 : i64, scratch_operands = 4 : i64, tpu.core_type = #tpu.core_type<tc>, window_params = [{transform_indices = @transform_0, window_bounds = array<i64: 1, 8, 32>}, {transform_indices = @transform_1, window_bounds = array<i64: 1, 8, 32>}, {transform_indices = @transform_2, window_bounds = array<i64: 1, 8, 32>}, {transform_indices = @transform_3, window_bounds = array<i64: 1, 8, 32>}]} {
    %c0_i32 = arith.constant 0 : i32
    %0 = arith.cmpi eq, %arg2, %c0_i32 : i32
    %1 = arith.extui %0 : i1 to i32
    %c0_i32_0 = arith.constant 0 : i32
    %2 = arith.cmpi ne, %1, %c0_i32_0 : i32
    scf.if %2 {
      %c0_97 = arith.constant 0 : index
      %c0_98 = arith.constant 0 : index
      %c0_99 = arith.constant 0 : index
      %170 = vector.load %arg3[%c0_97, %c0_98, %c0_99] : memref<1x8x32xbf16, #tpu.memory_space<vmem>>, vector<1x8x32xbf16>
      %171 = vector.shape_cast %170 : vector<1x8x32xbf16> to vector<8x32xbf16>
      %172 = arith.extf %171 : vector<8x32xbf16> to vector<8x32xf32>
      %cst_100 = arith.constant 0.353553385 : f32
      %173 = vector.broadcast %cst_100 : f32 to vector<8x32xf32>
      %174 = arith.mulf %172, %173 : vector<8x32xf32>
      %175 = arith.truncf %174 : vector<8x32xf32> to vector<8x32xbf16>
      %c0_101 = arith.constant 0 : index
      %c0_102 = arith.constant 0 : index
      %176 = vector.load %arg7[%c0_101, %c0_102] : memref<8x32xbf16, #tpu.memory_space<vmem>>, vector<8x32xbf16>
      tpu.vector_store %arg7[%c0_101, %c0_102], %175 {strides = array<i32>} : memref<8x32xbf16, #tpu.memory_space<vmem>>, vector<8x32xbf16>,
      %cst_103 = arith.constant 0xFF800000 : f32
      %177 = vector.broadcast %cst_103 : f32 to vector<4x8x128xf32>
      %c0_104 = arith.constant 0 : index
      %c0_105 = arith.constant 0 : index
      %c0_106 = arith.constant 0 : index
      %178 = vector.load %arg8[%c0_104, %c0_105, %c0_106] : memref<4x8x128xf32, #tpu.memory_space<vmem>>, vector<4x8x128xf32>
      tpu.vector_store %arg8[%c0_104, %c0_105, %c0_106], %177 {strides = array<i32>} : memref<4x8x128xf32, #tpu.memory_space<vmem>>, vector<4x8x128xf32>,
      %cst_107 = arith.constant 0.000000e+00 : f32
      %179 = vector.broadcast %cst_107 : f32 to vector<4x8x128xf32>
      %c0_108 = arith.constant 0 : index
      %c0_109 = arith.constant 0 : index
      %c0_110 = arith.constant 0 : index
      %180 = vector.load %arg9[%c0_108, %c0_109, %c0_110] : memref<4x8x128xf32, #tpu.memory_space<vmem>>, vector<4x8x128xf32>
      tpu.vector_store %arg9[%c0_108, %c0_109, %c0_110], %179 {strides = array<i32>} : memref<4x8x128xf32, #tpu.memory_space<vmem>>, vector<4x8x128xf32>,
      %cst_111 = arith.constant 0.000000e+00 : f32
      %181 = vector.broadcast %cst_111 : f32 to vector<4x8x8xf32>
      %c0_112 = arith.constant 0 : index
      %c0_113 = arith.constant 0 : index
      %c0_114 = arith.constant 0 : index
      %182 = vector.load %arg10[%c0_112, %c0_113, %c0_114] : memref<4x8x8xf32, #tpu.memory_space<vmem>>, vector<4x8x8xf32>
      tpu.vector_store %arg10[%c0_112, %c0_113, %c0_114], %181 {strides = array<i32>} : memref<4x8x8xf32, #tpu.memory_space<vmem>>, vector<4x8x8xf32>,
    } else {
    }
    %c0 = arith.constant 0 : index
    %c0_1 = arith.constant 0 : index
    %c0_2 = arith.constant 0 : index
    %3 = vector.load %arg4[%c0, %c0_1, %c0_2] : memref<1x8x32xbf16, #tpu.memory_space<vmem>>, vector<1x8x32xbf16>
    %4 = vector.shape_cast %3 : vector<1x8x32xbf16> to vector<8x32xbf16>
    %c0_3 = arith.constant 0 : index
    %c0_4 = arith.constant 0 : index
    %c0_5 = arith.constant 0 : index
    %5 = vector.load %arg5[%c0_3, %c0_4, %c0_5] : memref<1x8x32xbf16, #tpu.memory_space<vmem>>, vector<1x8x32xbf16>
    %6 = vector.shape_cast %5 : vector<1x8x32xbf16> to vector<8x32xbf16>
    %c0_6 = arith.constant 0 : index
    %c0_7 = arith.constant 0 : index
    %7 = vector.load %arg7[%c0_6, %c0_7] : memref<8x32xbf16, #tpu.memory_space<vmem>>, vector<8x8xbf16>
    %8 = vector.extract_strided_slice %4 {offsets = [0, 0], sizes = [8, 8], strides = [1, 1]} : vector<8x32xbf16> to vector<8x8xbf16>
    %9 = vector.extract_strided_slice %6 {offsets = [0, 0], sizes = [8, 8], strides = [1, 1]} : vector<8x32xbf16> to vector<8x8xbf16>
    %cst = arith.constant dense<0.000000e+00> : vector<8x8xf32>
    %10 = tpu.matmul %7, %8, %cst {dimension_numbers = #tpu.dot_dimension_numbers<[1], [1], [0], [0], [0, 0, 1, 0], [], []>} : vector<8x8xbf16>, vector<8x8xbf16>, vector<8x8xf32> -> vector<8x8xf32>
    %c0_8 = arith.constant 0 : index
    %c0_9 = arith.constant 0 : index
    %c0_10 = arith.constant 0 : index
    %11 = vector.load %arg8[%c0_8, %c0_9, %c0_10] : memref<4x8x128xf32, #tpu.memory_space<vmem>>, vector<1x8x128xf32>
    %12 = vector.shape_cast %11 : vector<1x8x128xf32> to vector<8x128xf32>
    %cst_11 = arith.constant dense<0xFF800000> : vector<8xf32>
    %13 = vector.multi_reduction <maximumf>, %10, %cst_11 [1] : vector<8x8xf32> to vector<8xf32>
    %14 = vector.shape_cast %13 : vector<8xf32> to vector<8x1xf32>
    %15 = vector.broadcast %14 : vector<8x1xf32> to vector<8x128xf32>
    %16 = arith.maximumf %12, %15 : vector<8x128xf32>
    %17 = arith.subf %12, %16 : vector<8x128xf32>
    %18 = math.exp %17 : vector<8x128xf32>
    %19 = vector.extract_strided_slice %16 {offsets = [0, 0], sizes = [8, 1], strides = [1, 1]} : vector<8x128xf32> to vector<8x1xf32>
    %20 = vector.broadcast %19 : vector<8x1xf32> to vector<8x8xf32>
    %21 = arith.subf %10, %20 : vector<8x8xf32>
    %22 = math.exp %21 : vector<8x8xf32>
    %c0_12 = arith.constant 0 : index
    %c0_13 = arith.constant 0 : index
    %c0_14 = arith.constant 0 : index
    %23 = vector.load %arg9[%c0_12, %c0_13, %c0_14] : memref<4x8x128xf32, #tpu.memory_space<vmem>>, vector<1x8x128xf32>
    %24 = vector.shape_cast %23 : vector<1x8x128xf32> to vector<8x128xf32>
    %25 = arith.mulf %18, %24 : vector<8x128xf32>
    %cst_15 = arith.constant dense<0.000000e+00> : vector<8xf32>
    %26 = vector.multi_reduction <add>, %22, %cst_15 [1] : vector<8x8xf32> to vector<8xf32>
    %27 = vector.shape_cast %26 : vector<8xf32> to vector<8x1xf32>
    %28 = vector.broadcast %27 : vector<8x1xf32> to vector<8x128xf32>
    %29 = arith.addf %25, %28 : vector<8x128xf32>
    %c0_16 = arith.constant 0 : index
    %c0_17 = arith.constant 0 : index
    %c0_18 = arith.constant 0 : index
    %30 = vector.load %arg9[%c0_16, %c0_17, %c0_18] : memref<4x8x128xf32, #tpu.memory_space<vmem>>, vector<1x8x128xf32>
    %31 = vector.shape_cast %30 : vector<1x8x128xf32> to vector<8x128xf32>
    %32 = vector.shape_cast %29 : vector<8x128xf32> to vector<1x8x128xf32>
    tpu.vector_store %arg9[%c0_16, %c0_17, %c0_18], %32 {strides = array<i32>} : memref<4x8x128xf32, #tpu.memory_space<vmem>>, vector<1x8x128xf32>,
    %33 = vector.extract_strided_slice %18 {offsets = [0, 0], sizes = [8, 1], strides = [1, 1]} : vector<8x128xf32> to vector<8x1xf32>
    %c0_19 = arith.constant 0 : index
    %c0_20 = arith.constant 0 : index
    %c0_21 = arith.constant 0 : index
    %34 = vector.load %arg10[%c0_19, %c0_20, %c0_21] : memref<4x8x8xf32, #tpu.memory_space<vmem>>, vector<1x8x8xf32>
    %35 = vector.shape_cast %34 : vector<1x8x8xf32> to vector<8x8xf32>
    %36 = vector.broadcast %33 : vector<8x1xf32> to vector<8x8xf32>
    %37 = arith.mulf %36, %35 : vector<8x8xf32>
    %38 = arith.truncf %22 : vector<8x8xf32> to vector<8x8xbf16>
    %cst_22 = arith.constant dense<0.000000e+00> : vector<8x8xf32>
    %39 = tpu.matmul %38, %9, %cst_22 {dimension_numbers = #tpu.dot_dimension_numbers<[1], [0], [0], [1], [0, 0, 1, 1], [], []>} : vector<8x8xbf16>, vector<8x8xbf16>, vector<8x8xf32> -> vector<8x8xf32>
    %40 = arith.addf %37, %39 : vector<8x8xf32>
    %c0_23 = arith.constant 0 : index
    %c0_24 = arith.constant 0 : index
    %c0_25 = arith.constant 0 : index
    %41 = vector.load %arg10[%c0_23, %c0_24, %c0_25] : memref<4x8x8xf32, #tpu.memory_space<vmem>>, vector<1x8x8xf32>
    %42 = vector.shape_cast %41 : vector<1x8x8xf32> to vector<8x8xf32>
    %43 = vector.shape_cast %40 : vector<8x8xf32> to vector<1x8x8xf32>
    tpu.vector_store %arg10[%c0_23, %c0_24, %c0_25], %43 {strides = array<i32>} : memref<4x8x8xf32, #tpu.memory_space<vmem>>, vector<1x8x8xf32>,
    %c0_26 = arith.constant 0 : index
    %c0_27 = arith.constant 0 : index
    %c0_28 = arith.constant 0 : index
    %44 = vector.load %arg8[%c0_26, %c0_27, %c0_28] : memref<4x8x128xf32, #tpu.memory_space<vmem>>, vector<1x8x128xf32>
    %45 = vector.shape_cast %44 : vector<1x8x128xf32> to vector<8x128xf32>
    %46 = vector.shape_cast %16 : vector<8x128xf32> to vector<1x8x128xf32>
    tpu.vector_store %arg8[%c0_26, %c0_27, %c0_28], %46 {strides = array<i32>} : memref<4x8x128xf32, #tpu.memory_space<vmem>>, vector<1x8x128xf32>,
    %c0_29 = arith.constant 0 : index
    %c8 = arith.constant 8 : index
    %47 = vector.load %arg7[%c0_29, %c8] : memref<8x32xbf16, #tpu.memory_space<vmem>>, vector<8x8xbf16>
    %48 = vector.extract_strided_slice %4 {offsets = [0, 8], sizes = [8, 8], strides = [1, 1]} : vector<8x32xbf16> to vector<8x8xbf16>
    %49 = vector.extract_strided_slice %6 {offsets = [0, 8], sizes = [8, 8], strides = [1, 1]} : vector<8x32xbf16> to vector<8x8xbf16>
    %cst_30 = arith.constant dense<0.000000e+00> : vector<8x8xf32>
    %50 = tpu.matmul %47, %48, %cst_30 {dimension_numbers = #tpu.dot_dimension_numbers<[1], [1], [0], [0], [0, 0, 1, 0], [], []>} : vector<8x8xbf16>, vector<8x8xbf16>, vector<8x8xf32> -> vector<8x8xf32>
    %c1 = arith.constant 1 : index
    %c0_31 = arith.constant 0 : index
    %c0_32 = arith.constant 0 : index
    %51 = vector.load %arg8[%c1, %c0_31, %c0_32] : memref<4x8x128xf32, #tpu.memory_space<vmem>>, vector<1x8x128xf32>
    %52 = vector.shape_cast %51 : vector<1x8x128xf32> to vector<8x128xf32>
    %cst_33 = arith.constant dense<0xFF800000> : vector<8xf32>
    %53 = vector.multi_reduction <maximumf>, %50, %cst_33 [1] : vector<8x8xf32> to vector<8xf32>
    %54 = vector.shape_cast %53 : vector<8xf32> to vector<8x1xf32>
    %55 = vector.broadcast %54 : vector<8x1xf32> to vector<8x128xf32>
    %56 = arith.maximumf %52, %55 : vector<8x128xf32>
    %57 = arith.subf %52, %56 : vector<8x128xf32>
    %58 = math.exp %57 : vector<8x128xf32>
    %59 = vector.extract_strided_slice %56 {offsets = [0, 0], sizes = [8, 1], strides = [1, 1]} : vector<8x128xf32> to vector<8x1xf32>
    %60 = vector.broadcast %59 : vector<8x1xf32> to vector<8x8xf32>
    %61 = arith.subf %50, %60 : vector<8x8xf32>
    %62 = math.exp %61 : vector<8x8xf32>
    %c1_34 = arith.constant 1 : index
    %c0_35 = arith.constant 0 : index
    %c0_36 = arith.constant 0 : index
    %63 = vector.load %arg9[%c1_34, %c0_35, %c0_36] : memref<4x8x128xf32, #tpu.memory_space<vmem>>, vector<1x8x128xf32>
    %64 = vector.shape_cast %63 : vector<1x8x128xf32> to vector<8x128xf32>
    %65 = arith.mulf %58, %64 : vector<8x128xf32>
    %cst_37 = arith.constant dense<0.000000e+00> : vector<8xf32>
    %66 = vector.multi_reduction <add>, %62, %cst_37 [1] : vector<8x8xf32> to vector<8xf32>
    %67 = vector.shape_cast %66 : vector<8xf32> to vector<8x1xf32>
    %68 = vector.broadcast %67 : vector<8x1xf32> to vector<8x128xf32>
    %69 = arith.addf %65, %68 : vector<8x128xf32>
    %c1_38 = arith.constant 1 : index
    %c0_39 = arith.constant 0 : index
    %c0_40 = arith.constant 0 : index
    %70 = vector.load %arg9[%c1_38, %c0_39, %c0_40] : memref<4x8x128xf32, #tpu.memory_space<vmem>>, vector<1x8x128xf32>
    %71 = vector.shape_cast %70 : vector<1x8x128xf32> to vector<8x128xf32>
    %72 = vector.shape_cast %69 : vector<8x128xf32> to vector<1x8x128xf32>
    tpu.vector_store %arg9[%c1_38, %c0_39, %c0_40], %72 {strides = array<i32>} : memref<4x8x128xf32, #tpu.memory_space<vmem>>, vector<1x8x128xf32>,
    %73 = vector.extract_strided_slice %58 {offsets = [0, 0], sizes = [8, 1], strides = [1, 1]} : vector<8x128xf32> to vector<8x1xf32>
    %c1_41 = arith.constant 1 : index
    %c0_42 = arith.constant 0 : index
    %c0_43 = arith.constant 0 : index
    %74 = vector.load %arg10[%c1_41, %c0_42, %c0_43] : memref<4x8x8xf32, #tpu.memory_space<vmem>>, vector<1x8x8xf32>
    %75 = vector.shape_cast %74 : vector<1x8x8xf32> to vector<8x8xf32>
    %76 = vector.broadcast %73 : vector<8x1xf32> to vector<8x8xf32>
    %77 = arith.mulf %76, %75 : vector<8x8xf32>
    %78 = arith.truncf %62 : vector<8x8xf32> to vector<8x8xbf16>
    %cst_44 = arith.constant dense<0.000000e+00> : vector<8x8xf32>
    %79 = tpu.matmul %78, %49, %cst_44 {dimension_numbers = #tpu.dot_dimension_numbers<[1], [0], [0], [1], [0, 0, 1, 1], [], []>} : vector<8x8xbf16>, vector<8x8xbf16>, vector<8x8xf32> -> vector<8x8xf32>
    %80 = arith.addf %77, %79 : vector<8x8xf32>
    %c1_45 = arith.constant 1 : index
    %c0_46 = arith.constant 0 : index
    %c0_47 = arith.constant 0 : index
    %81 = vector.load %arg10[%c1_45, %c0_46, %c0_47] : memref<4x8x8xf32, #tpu.memory_space<vmem>>, vector<1x8x8xf32>
    %82 = vector.shape_cast %81 : vector<1x8x8xf32> to vector<8x8xf32>
    %83 = vector.shape_cast %80 : vector<8x8xf32> to vector<1x8x8xf32>
    tpu.vector_store %arg10[%c1_45, %c0_46, %c0_47], %83 {strides = array<i32>} : memref<4x8x8xf32, #tpu.memory_space<vmem>>, vector<1x8x8xf32>,
    %c1_48 = arith.constant 1 : index
    %c0_49 = arith.constant 0 : index
    %c0_50 = arith.constant 0 : index
    %84 = vector.load %arg8[%c1_48, %c0_49, %c0_50] : memref<4x8x128xf32, #tpu.memory_space<vmem>>, vector<1x8x128xf32>
    %85 = vector.shape_cast %84 : vector<1x8x128xf32> to vector<8x128xf32>
    %86 = vector.shape_cast %56 : vector<8x128xf32> to vector<1x8x128xf32>
    tpu.vector_store %arg8[%c1_48, %c0_49, %c0_50], %86 {strides = array<i32>} : memref<4x8x128xf32, #tpu.memory_space<vmem>>, vector<1x8x128xf32>,
    %c0_51 = arith.constant 0 : index
    %c16 = arith.constant 16 : index
    %87 = vector.load %arg7[%c0_51, %c16] : memref<8x32xbf16, #tpu.memory_space<vmem>>, vector<8x8xbf16>
    %88 = vector.extract_strided_slice %4 {offsets = [0, 16], sizes = [8, 8], strides = [1, 1]} : vector<8x32xbf16> to vector<8x8xbf16>
    %89 = vector.extract_strided_slice %6 {offsets = [0, 16], sizes = [8, 8], strides = [1, 1]} : vector<8x32xbf16> to vector<8x8xbf16>
    %cst_52 = arith.constant dense<0.000000e+00> : vector<8x8xf32>
    %90 = tpu.matmul %87, %88, %cst_52 {dimension_numbers = #tpu.dot_dimension_numbers<[1], [1], [0], [0], [0, 0, 1, 0], [], []>} : vector<8x8xbf16>, vector<8x8xbf16>, vector<8x8xf32> -> vector<8x8xf32>
    %c2 = arith.constant 2 : index
    %c0_53 = arith.constant 0 : index
    %c0_54 = arith.constant 0 : index
    %91 = vector.load %arg8[%c2, %c0_53, %c0_54] : memref<4x8x128xf32, #tpu.memory_space<vmem>>, vector<1x8x128xf32>
    %92 = vector.shape_cast %91 : vector<1x8x128xf32> to vector<8x128xf32>
    %cst_55 = arith.constant dense<0xFF800000> : vector<8xf32>
    %93 = vector.multi_reduction <maximumf>, %90, %cst_55 [1] : vector<8x8xf32> to vector<8xf32>
    %94 = vector.shape_cast %93 : vector<8xf32> to vector<8x1xf32>
    %95 = vector.broadcast %94 : vector<8x1xf32> to vector<8x128xf32>
    %96 = arith.maximumf %92, %95 : vector<8x128xf32>
    %97 = arith.subf %92, %96 : vector<8x128xf32>
    %98 = math.exp %97 : vector<8x128xf32>
    %99 = vector.extract_strided_slice %96 {offsets = [0, 0], sizes = [8, 1], strides = [1, 1]} : vector<8x128xf32> to vector<8x1xf32>
    %100 = vector.broadcast %99 : vector<8x1xf32> to vector<8x8xf32>
    %101 = arith.subf %90, %100 : vector<8x8xf32>
    %102 = math.exp %101 : vector<8x8xf32>
    %c2_56 = arith.constant 2 : index
    %c0_57 = arith.constant 0 : index
    %c0_58 = arith.constant 0 : index
    %103 = vector.load %arg9[%c2_56, %c0_57, %c0_58] : memref<4x8x128xf32, #tpu.memory_space<vmem>>, vector<1x8x128xf32>
    %104 = vector.shape_cast %103 : vector<1x8x128xf32> to vector<8x128xf32>
    %105 = arith.mulf %98, %104 : vector<8x128xf32>
    %cst_59 = arith.constant dense<0.000000e+00> : vector<8xf32>
    %106 = vector.multi_reduction <add>, %102, %cst_59 [1] : vector<8x8xf32> to vector<8xf32>
    %107 = vector.shape_cast %106 : vector<8xf32> to vector<8x1xf32>
    %108 = vector.broadcast %107 : vector<8x1xf32> to vector<8x128xf32>
    %109 = arith.addf %105, %108 : vector<8x128xf32>
    %c2_60 = arith.constant 2 : index
    %c0_61 = arith.constant 0 : index
    %c0_62 = arith.constant 0 : index
    %110 = vector.load %arg9[%c2_60, %c0_61, %c0_62] : memref<4x8x128xf32, #tpu.memory_space<vmem>>, vector<1x8x128xf32>
    %111 = vector.shape_cast %110 : vector<1x8x128xf32> to vector<8x128xf32>
    %112 = vector.shape_cast %109 : vector<8x128xf32> to vector<1x8x128xf32>
    tpu.vector_store %arg9[%c2_60, %c0_61, %c0_62], %112 {strides = array<i32>} : memref<4x8x128xf32, #tpu.memory_space<vmem>>, vector<1x8x128xf32>,
    %113 = vector.extract_strided_slice %98 {offsets = [0, 0], sizes = [8, 1], strides = [1, 1]} : vector<8x128xf32> to vector<8x1xf32>
    %c2_63 = arith.constant 2 : index
    %c0_64 = arith.constant 0 : index
    %c0_65 = arith.constant 0 : index
    %114 = vector.load %arg10[%c2_63, %c0_64, %c0_65] : memref<4x8x8xf32, #tpu.memory_space<vmem>>, vector<1x8x8xf32>
    %115 = vector.shape_cast %114 : vector<1x8x8xf32> to vector<8x8xf32>
    %116 = vector.broadcast %113 : vector<8x1xf32> to vector<8x8xf32>
    %117 = arith.mulf %116, %115 : vector<8x8xf32>
    %118 = arith.truncf %102 : vector<8x8xf32> to vector<8x8xbf16>
    %cst_66 = arith.constant dense<0.000000e+00> : vector<8x8xf32>
    %119 = tpu.matmul %118, %89, %cst_66 {dimension_numbers = #tpu.dot_dimension_numbers<[1], [0], [0], [1], [0, 0, 1, 1], [], []>} : vector<8x8xbf16>, vector<8x8xbf16>, vector<8x8xf32> -> vector<8x8xf32>
    %120 = arith.addf %117, %119 : vector<8x8xf32>
    %c2_67 = arith.constant 2 : index
    %c0_68 = arith.constant 0 : index
    %c0_69 = arith.constant 0 : index
    %121 = vector.load %arg10[%c2_67, %c0_68, %c0_69] : memref<4x8x8xf32, #tpu.memory_space<vmem>>, vector<1x8x8xf32>
    %122 = vector.shape_cast %121 : vector<1x8x8xf32> to vector<8x8xf32>
    %123 = vector.shape_cast %120 : vector<8x8xf32> to vector<1x8x8xf32>
    tpu.vector_store %arg10[%c2_67, %c0_68, %c0_69], %123 {strides = array<i32>} : memref<4x8x8xf32, #tpu.memory_space<vmem>>, vector<1x8x8xf32>,
    %c2_70 = arith.constant 2 : index
    %c0_71 = arith.constant 0 : index
    %c0_72 = arith.constant 0 : index
    %124 = vector.load %arg8[%c2_70, %c0_71, %c0_72] : memref<4x8x128xf32, #tpu.memory_space<vmem>>, vector<1x8x128xf32>
    %125 = vector.shape_cast %124 : vector<1x8x128xf32> to vector<8x128xf32>
    %126 = vector.shape_cast %96 : vector<8x128xf32> to vector<1x8x128xf32>
    tpu.vector_store %arg8[%c2_70, %c0_71, %c0_72], %126 {strides = array<i32>} : memref<4x8x128xf32, #tpu.memory_space<vmem>>, vector<1x8x128xf32>,
    %c0_73 = arith.constant 0 : index
    %c24 = arith.constant 24 : index
    %127 = vector.load %arg7[%c0_73, %c24] : memref<8x32xbf16, #tpu.memory_space<vmem>>, vector<8x8xbf16>
    %128 = vector.extract_strided_slice %4 {offsets = [0, 24], sizes = [8, 8], strides = [1, 1]} : vector<8x32xbf16> to vector<8x8xbf16>
    %129 = vector.extract_strided_slice %6 {offsets = [0, 24], sizes = [8, 8], strides = [1, 1]} : vector<8x32xbf16> to vector<8x8xbf16>
    %cst_74 = arith.constant dense<0.000000e+00> : vector<8x8xf32>
    %130 = tpu.matmul %127, %128, %cst_74 {dimension_numbers = #tpu.dot_dimension_numbers<[1], [1], [0], [0], [0, 0, 1, 0], [], []>} : vector<8x8xbf16>, vector<8x8xbf16>, vector<8x8xf32> -> vector<8x8xf32>
    %c3 = arith.constant 3 : index
    %c0_75 = arith.constant 0 : index
    %c0_76 = arith.constant 0 : index
    %131 = vector.load %arg8[%c3, %c0_75, %c0_76] : memref<4x8x128xf32, #tpu.memory_space<vmem>>, vector<1x8x128xf32>
    %132 = vector.shape_cast %131 : vector<1x8x128xf32> to vector<8x128xf32>
    %cst_77 = arith.constant dense<0xFF800000> : vector<8xf32>
    %133 = vector.multi_reduction <maximumf>, %130, %cst_77 [1] : vector<8x8xf32> to vector<8xf32>
    %134 = vector.shape_cast %133 : vector<8xf32> to vector<8x1xf32>
    %135 = vector.broadcast %134 : vector<8x1xf32> to vector<8x128xf32>
    %136 = arith.maximumf %132, %135 : vector<8x128xf32>
    %137 = arith.subf %132, %136 : vector<8x128xf32>
    %138 = math.exp %137 : vector<8x128xf32>
    %139 = vector.extract_strided_slice %136 {offsets = [0, 0], sizes = [8, 1], strides = [1, 1]} : vector<8x128xf32> to vector<8x1xf32>
    %140 = vector.broadcast %139 : vector<8x1xf32> to vector<8x8xf32>
    %141 = arith.subf %130, %140 : vector<8x8xf32>
    %142 = math.exp %141 : vector<8x8xf32>
    %c3_78 = arith.constant 3 : index
    %c0_79 = arith.constant 0 : index
    %c0_80 = arith.constant 0 : index
    %143 = vector.load %arg9[%c3_78, %c0_79, %c0_80] : memref<4x8x128xf32, #tpu.memory_space<vmem>>, vector<1x8x128xf32>
    %144 = vector.shape_cast %143 : vector<1x8x128xf32> to vector<8x128xf32>
    %145 = arith.mulf %138, %144 : vector<8x128xf32>
    %cst_81 = arith.constant dense<0.000000e+00> : vector<8xf32>
    %146 = vector.multi_reduction <add>, %142, %cst_81 [1] : vector<8x8xf32> to vector<8xf32>
    %147 = vector.shape_cast %146 : vector<8xf32> to vector<8x1xf32>
    %148 = vector.broadcast %147 : vector<8x1xf32> to vector<8x128xf32>
    %149 = arith.addf %145, %148 : vector<8x128xf32>
    %c3_82 = arith.constant 3 : index
    %c0_83 = arith.constant 0 : index
    %c0_84 = arith.constant 0 : index
    %150 = vector.load %arg9[%c3_82, %c0_83, %c0_84] : memref<4x8x128xf32, #tpu.memory_space<vmem>>, vector<1x8x128xf32>
    %151 = vector.shape_cast %150 : vector<1x8x128xf32> to vector<8x128xf32>
    %152 = vector.shape_cast %149 : vector<8x128xf32> to vector<1x8x128xf32>
    tpu.vector_store %arg9[%c3_82, %c0_83, %c0_84], %152 {strides = array<i32>} : memref<4x8x128xf32, #tpu.memory_space<vmem>>, vector<1x8x128xf32>,
    %153 = vector.extract_strided_slice %138 {offsets = [0, 0], sizes = [8, 1], strides = [1, 1]} : vector<8x128xf32> to vector<8x1xf32>
    %c3_85 = arith.constant 3 : index
    %c0_86 = arith.constant 0 : index
    %c0_87 = arith.constant 0 : index
    %154 = vector.load %arg10[%c3_85, %c0_86, %c0_87] : memref<4x8x8xf32, #tpu.memory_space<vmem>>, vector<1x8x8xf32>
    %155 = vector.shape_cast %154 : vector<1x8x8xf32> to vector<8x8xf32>
    %156 = vector.broadcast %153 : vector<8x1xf32> to vector<8x8xf32>
    %157 = arith.mulf %156, %155 : vector<8x8xf32>
    %158 = arith.truncf %142 : vector<8x8xf32> to vector<8x8xbf16>
    %cst_88 = arith.constant dense<0.000000e+00> : vector<8x8xf32>
    %159 = tpu.matmul %158, %129, %cst_88 {dimension_numbers = #tpu.dot_dimension_numbers<[1], [0], [0], [1], [0, 0, 1, 1], [], []>} : vector<8x8xbf16>, vector<8x8xbf16>, vector<8x8xf32> -> vector<8x8xf32>
    %160 = arith.addf %157, %159 : vector<8x8xf32>
    %c3_89 = arith.constant 3 : index
    %c0_90 = arith.constant 0 : index
    %c0_91 = arith.constant 0 : index
    %161 = vector.load %arg10[%c3_89, %c0_90, %c0_91] : memref<4x8x8xf32, #tpu.memory_space<vmem>>, vector<1x8x8xf32>
    %162 = vector.shape_cast %161 : vector<1x8x8xf32> to vector<8x8xf32>
    %163 = vector.shape_cast %160 : vector<8x8xf32> to vector<1x8x8xf32>
    tpu.vector_store %arg10[%c3_89, %c0_90, %c0_91], %163 {strides = array<i32>} : memref<4x8x8xf32, #tpu.memory_space<vmem>>, vector<1x8x8xf32>,
    %c3_92 = arith.constant 3 : index
    %c0_93 = arith.constant 0 : index
    %c0_94 = arith.constant 0 : index
    %164 = vector.load %arg8[%c3_92, %c0_93, %c0_94] : memref<4x8x128xf32, #tpu.memory_space<vmem>>, vector<1x8x128xf32>
    %165 = vector.shape_cast %164 : vector<1x8x128xf32> to vector<8x128xf32>
    %166 = vector.shape_cast %136 : vector<8x128xf32> to vector<1x8x128xf32>
    tpu.vector_store %arg8[%c3_92, %c0_93, %c0_94], %166 {strides = array<i32>} : memref<4x8x128xf32, #tpu.memory_space<vmem>>, vector<1x8x128xf32>,
    %c0_i32_95 = arith.constant 0 : i32
    %167 = arith.cmpi eq, %arg2, %c0_i32_95 : i32
    %168 = arith.extui %167 : i1 to i32
    %c0_i32_96 = arith.constant 0 : i32
    %169 = arith.cmpi ne, %168, %c0_i32_96 : i32
    scf.if %169 {
      %c0_97 = arith.constant 0 : index
      %c0_98 = arith.constant 0 : index
      %c0_99 = arith.constant 0 : index
      %170 = vector.load %arg9[%c0_97, %c0_98, %c0_99] : memref<4x8x128xf32, #tpu.memory_space<vmem>>, vector<1x8x128xf32>
      %171 = vector.shape_cast %170 : vector<1x8x128xf32> to vector<8x128xf32>
      %172 = vector.extract_strided_slice %171 {offsets = [0, 0], sizes = [8, 1], strides = [1, 1]} : vector<8x128xf32> to vector<8x1xf32>
      %c0_100 = arith.constant 0 : index
      %c0_101 = arith.constant 0 : index
      %c0_102 = arith.constant 0 : index
      %173 = vector.load %arg10[%c0_100, %c0_101, %c0_102] : memref<4x8x8xf32, #tpu.memory_space<vmem>>, vector<1x8x8xf32>
      %174 = vector.shape_cast %173 : vector<1x8x8xf32> to vector<8x8xf32>
      %175 = tpu.reciprocal %172 : vector<8x1xf32> -> vector<8x1xf32>
      %176 = vector.broadcast %175 : vector<8x1xf32> to vector<8x8xf32>
      %177 = arith.mulf %174, %176 : vector<8x8xf32>
      %178 = arith.truncf %177 : vector<8x8xf32> to vector<8x8xbf16>
      %c0_103 = arith.constant 0 : index
      %c0_104 = arith.constant 0 : index
      %c0_105 = arith.constant 0 : index
      %179 = vector.load %arg6[%c0_103, %c0_104, %c0_105] : memref<1x8x32xbf16, #tpu.memory_space<vmem>>, vector<1x8x8xbf16>
      %180 = vector.shape_cast %179 : vector<1x8x8xbf16> to vector<8x8xbf16>
      %181 = vector.shape_cast %178 : vector<8x8xbf16> to vector<1x8x8xbf16>
      tpu.vector_store %arg6[%c0_103, %c0_104, %c0_105], %181 {strides = array<i32>} : memref<1x8x32xbf16, #tpu.memory_space<vmem>>, vector<1x8x8xbf16>,
      %c1_106 = arith.constant 1 : index
      %c0_107 = arith.constant 0 : index
      %c0_108 = arith.constant 0 : index
      %182 = vector.load %arg9[%c1_106, %c0_107, %c0_108] : memref<4x8x128xf32, #tpu.memory_space<vmem>>, vector<1x8x128xf32>
      %183 = vector.shape_cast %182 : vector<1x8x128xf32> to vector<8x128xf32>
      %184 = vector.extract_strided_slice %183 {offsets = [0, 0], sizes = [8, 1], strides = [1, 1]} : vector<8x128xf32> to vector<8x1xf32>
      %c1_109 = arith.constant 1 : index
      %c0_110 = arith.constant 0 : index
      %c0_111 = arith.constant 0 : index
      %185 = vector.load %arg10[%c1_109, %c0_110, %c0_111] : memref<4x8x8xf32, #tpu.memory_space<vmem>>, vector<1x8x8xf32>
      %186 = vector.shape_cast %185 : vector<1x8x8xf32> to vector<8x8xf32>
      %187 = tpu.reciprocal %184 : vector<8x1xf32> -> vector<8x1xf32>
      %188 = vector.broadcast %187 : vector<8x1xf32> to vector<8x8xf32>
      %189 = arith.mulf %186, %188 : vector<8x8xf32>
      %190 = arith.truncf %189 : vector<8x8xf32> to vector<8x8xbf16>
      %c0_112 = arith.constant 0 : index
      %c0_113 = arith.constant 0 : index
      %c8_114 = arith.constant 8 : index
      %191 = vector.load %arg6[%c0_112, %c0_113, %c8_114] : memref<1x8x32xbf16, #tpu.memory_space<vmem>>, vector<1x8x8xbf16>
      %192 = vector.shape_cast %191 : vector<1x8x8xbf16> to vector<8x8xbf16>
      %193 = vector.shape_cast %190 : vector<8x8xbf16> to vector<1x8x8xbf16>
      tpu.vector_store %arg6[%c0_112, %c0_113, %c8_114], %193 {strides = array<i32>} : memref<1x8x32xbf16, #tpu.memory_space<vmem>>, vector<1x8x8xbf16>,
      %c2_115 = arith.constant 2 : index
      %c0_116 = arith.constant 0 : index
      %c0_117 = arith.constant 0 : index
      %194 = vector.load %arg9[%c2_115, %c0_116, %c0_117] : memref<4x8x128xf32, #tpu.memory_space<vmem>>, vector<1x8x128xf32>
      %195 = vector.shape_cast %194 : vector<1x8x128xf32> to vector<8x128xf32>
      %196 = vector.extract_strided_slice %195 {offsets = [0, 0], sizes = [8, 1], strides = [1, 1]} : vector<8x128xf32> to vector<8x1xf32>
      %c2_118 = arith.constant 2 : index
      %c0_119 = arith.constant 0 : index
      %c0_120 = arith.constant 0 : index
      %197 = vector.load %arg10[%c2_118, %c0_119, %c0_120] : memref<4x8x8xf32, #tpu.memory_space<vmem>>, vector<1x8x8xf32>
      %198 = vector.shape_cast %197 : vector<1x8x8xf32> to vector<8x8xf32>
      %199 = tpu.reciprocal %196 : vector<8x1xf32> -> vector<8x1xf32>
      %200 = vector.broadcast %199 : vector<8x1xf32> to vector<8x8xf32>
      %201 = arith.mulf %198, %200 : vector<8x8xf32>
      %202 = arith.truncf %201 : vector<8x8xf32> to vector<8x8xbf16>
      %c0_121 = arith.constant 0 : index
      %c0_122 = arith.constant 0 : index
      %c16_123 = arith.constant 16 : index
      %203 = vector.load %arg6[%c0_121, %c0_122, %c16_123] : memref<1x8x32xbf16, #tpu.memory_space<vmem>>, vector<1x8x8xbf16>
      %204 = vector.shape_cast %203 : vector<1x8x8xbf16> to vector<8x8xbf16>
      %205 = vector.shape_cast %202 : vector<8x8xbf16> to vector<1x8x8xbf16>
      tpu.vector_store %arg6[%c0_121, %c0_122, %c16_123], %205 {strides = array<i32>} : memref<1x8x32xbf16, #tpu.memory_space<vmem>>, vector<1x8x8xbf16>,
      %c3_124 = arith.constant 3 : index
      %c0_125 = arith.constant 0 : index
      %c0_126 = arith.constant 0 : index
      %206 = vector.load %arg9[%c3_124, %c0_125, %c0_126] : memref<4x8x128xf32, #tpu.memory_space<vmem>>, vector<1x8x128xf32>
      %207 = vector.shape_cast %206 : vector<1x8x128xf32> to vector<8x128xf32>
      %208 = vector.extract_strided_slice %207 {offsets = [0, 0], sizes = [8, 1], strides = [1, 1]} : vector<8x128xf32> to vector<8x1xf32>
      %c3_127 = arith.constant 3 : index
      %c0_128 = arith.constant 0 : index
      %c0_129 = arith.constant 0 : index
      %209 = vector.load %arg10[%c3_127, %c0_128, %c0_129] : memref<4x8x8xf32, #tpu.memory_space<vmem>>, vector<1x8x8xf32>
      %210 = vector.shape_cast %209 : vector<1x8x8xf32> to vector<8x8xf32>
      %211 = tpu.reciprocal %208 : vector<8x1xf32> -> vector<8x1xf32>
      %212 = vector.broadcast %211 : vector<8x1xf32> to vector<8x8xf32>
      %213 = arith.mulf %210, %212 : vector<8x8xf32>
      %214 = arith.truncf %213 : vector<8x8xf32> to vector<8x8xbf16>
      %c0_130 = arith.constant 0 : index
      %c0_131 = arith.constant 0 : index
      %c24_132 = arith.constant 24 : index
      %215 = vector.load %arg6[%c0_130, %c0_131, %c24_132] : memref<1x8x32xbf16, #tpu.memory_space<vmem>>, vector<1x8x8xbf16>
      %216 = vector.shape_cast %215 : vector<1x8x8xbf16> to vector<8x8xbf16>
      %217 = vector.shape_cast %214 : vector<8x8xbf16> to vector<1x8x8xbf16>
      tpu.vector_store %arg6[%c0_130, %c0_131, %c24_132], %217 {strides = array<i32>} : memref<1x8x32xbf16, #tpu.memory_space<vmem>>, vector<1x8x8xbf16>,
    } else {
    }
    return
  }
  func.func @transform_0(%arg0: i32, %arg1: i32, %arg2: i32) -> (i32, i32, i32) {
    %c0_i32 = arith.constant 0 : i32
    %c0_i32_0 = arith.constant 0 : i32
    return %arg0, %arg1, %c0_i32 : i32, i32, i32
  }
  func.func @transform_1(%arg0: i32, %arg1: i32, %arg2: i32) -> (i32, i32, i32) {
    %c0_i32 = arith.constant 0 : i32
    %c0_i32_0 = arith.constant 0 : i32
    return %arg0, %arg2, %c0_i32 : i32, i32, i32
  }
  func.func @transform_2(%arg0: i32, %arg1: i32, %arg2: i32) -> (i32, i32, i32) {
    %c0_i32 = arith.constant 0 : i32
    %c0_i32_0 = arith.constant 0 : i32
    return %arg0, %arg2, %c0_i32 : i32, i32, i32
  }
  func.func @transform_3(%arg0: i32, %arg1: i32, %arg2: i32) -> (i32, i32, i32) {
    %c0_i32 = arith.constant 0 : i32
    %c0_i32_0 = arith.constant 0 : i32
    return %arg0, %arg1, %c0_i32 : i32, i32, i32
  }
}

</mosaic_0001>

<bundles_post_ra>
// kernel: tpu_custom_call.1
= control target key start
LH: loop header
LB: loop body
LE: loop exit
PB: predicated region body
PF: predicated region fallthrough
CT: control target
= control target key end

     0   :  { %s1781_s0 = inlined_call_operand.hbm [shape: bf16[2,8,32], index: 0, kind: input, shape index: {}]   ;;  %s1782_s1 = inlined_call_operand.hbm [shape: bf16[2,8,32], index: 1, kind: input, shape index: {}]   ;;  %s1783_s2 = inlined_call_operand.hbm [shape: bf16[2,8,32], index: 2, kind: input, shape index: {}]   ;;  %s1784_s3 = inlined_call_operand.hbm [shape: bf16[2,8,32], index: 3, kind: output, shape index: {}]  }
   0x1   :  { %1788 = sst [smem:[#allocation18_spill]] %s1782_s1 }
   0x2   :  { %8 = vsyncpa [#allocation7], 0 }
   0x3   :  { %10 = vsyncpa [#allocation7 + $0x1], 0 }
   0x4   :  { %11 = vsyncpa [#allocation10], 0 }
   0x5   :  { %13 = vsyncpa [#allocation10 + $0x1], 0 }
   0x6   :  { %14 = vsyncpa [#allocation8], 0 }
   0x7   :  { %16 = vsyncpa [#allocation8 + $0x1], 0  ;;  %s1494_s12 = smov 0   ;;  %s1496_s13 = smov 0  }
   0x8   :  { %s1498_s14 = smov 0   ;;  %s1500_s15 = smov 0  }
   0x9   :  { %s1502_s16 = smov 0   ;;  %s1504_s17 = smov 0  }
   0xa LB: > { %1789 = sst [smem:[#allocation16_spill]] %s1455_s16  ;;  %s1525_s18 = sadd.s32 4294967295, %s1459_s17   ;;  %s1459_s17 = sphi %s1504_s17, %s22_s17   ;;  %s1455_s16 = sphi %s1502_s16, %s1801_s16   ;;  %s1451_s15 = sphi %s1500_s15, %s1800_s15   ;;  %s1447_s14 = sphi %s1498_s14, %s1804_s14   ;;  %s1443_s13 = sphi %s1496_s13, %s1803_s13   ;;  %s1439_s12 = sphi %s1494_s12, %s1802_s12  }
   0xb   : > { %s1078_s19 = sadd.s32 4294967294, %s1459_s17   ;;  %s41_s20 = sadd.s32 1, %s1455_s16 }
   0xc   : > { %s50_s21 = sadd.s32 1, %s1447_s14  ;;  %p43_p0 = scmp.ge.s32.totalorder %s41_s20, 2 }
   0xd   : > { %p57_p1 = scmp.ne.s32.totalorder %s1447_s14, %s1443_s13  ;;  %p58_p2 = scmp.eq.s32.totalorder %s1459_s17, 0 }
   0xe   : > { %p63_p3 = scmp.ne.s32.totalorder %s1443_s13, %s1439_s12  ;;  %s1806_s20 = smov (%p43_p0, %s41_s20), 0 }
   0xf   : > { %1790 = sst [smem:[#allocation17_spill]] %s1806_s20  ;;  %p1537_p4 = por %p58_p2, %p57_p1 }
  0x10   : > { %p64_p5 = scmp.eq.s32.totalorder %s1525_s18, 0  ;;  %s45_s23 = ssub.s32 %s1455_s16, %s1806_s20 }
  0x11   : > { %p145_p6 = scmp.eq.s32.totalorder %s1525_s18, 1  ;;  %p48_p7 = scmp.eq.s32.totalorder %s45_s23, 0 }
  0x12   : > { %p1545_p8 = por %p64_p5, %p63_p3  ;;  %p151_p10 = scmp.eq.s32.totalorder %s1078_s19, 1 }
  0x13   : > { %p1549_p9 = por %p145_p6, %p57_p1  ;;  %p1201_p13 = scmp.lt.s32.totalorder %s1459_s17, 2 }
  0x14   : > { %s1554_s26 = scalar_select %p48_p7, %s1447_s14, %s50_s21  }
  0x15   : > { %p1556_p11 = por %p151_p10, %p63_p3  ;;  %s1785_s28 = sand.u32 1, %s1447_s14  }
  0x16   : > { %s1565_s29 = sshll.u32 %s1785_s28, 2  ;;  %s1568_s30 = sshll.u32 %s1455_s16, 6 }
  0x17   : > { %p1572_p0 = pnand %p1201_p13, %p1537_p4  ;;  %s190_s5 = sand.u32 1, %s1459_s17  }
  0x18   : > { %s1796_s1 = sld [smem:[#allocation18_spill]]  ;;  %s194_s9 = scalar_lea.vmem [#allocation9], %s1565_s29 }
  0x19   : > { %s202_s10 = sshll.u32 %s194_s9, 4  ;;  %p1087_p1 = scmp.ge.s32.totalorder %s1459_s17, 1  ;;  %s203_s10 = int_to_ptr.vmem [resolvable:$true] %s202_s10 }
  0x1a   : > { %p226_p2 = scmp.lt.s32.totalorder %s1459_s17, 3  ;;  %s1584_s11 = scalar_lea.sflag [#allocation10], %s190_s5 }
  0x1b   : > { %p1293_p3 = pneg %p1572_p0  ;;  %s1304_s19 = scalar_lea.vmem %s203_s10, 64 }
  0x1c   : > { %p1305_p4 = scmp.ne.s32.totalorder %s203_s10, %s1304_s19  ;;  %s1461_s21 = smov [#allocation9]  }
  0x1d   : > { %s1309_s22 = sshll.u32 %s1461_s21, 4  ;;  %s1310_s22 = int_to_ptr.vmem [resolvable:$false] %s1309_s22 }
  0x1e   : > { %s200_s8 = scalar_lea.hbm %s1796_s1, %s1568_s30  ;;  %p1307_p5 = pnand %p1305_p4, %p1293_p3 }
  0x1f   : > { %s1311_s23 = scalar_lea.vmem %s1310_s22, 128  ;;  %p1312_p7 = scmp.lt.s32.totalorder %s203_s10, %s1310_s22 }
  0x20   : > { %p1308_p6 = pneg %p1307_p5  ;;  %p1313_p10 = scmp.lt.s32.totalorder %s1311_s23, %s1304_s19 }
  0x22   : > { %p1314_p13 = por %p1313_p10, %p1312_p7 }
  0x24   : > { %p1315_p12 = pnand %p1314_p13, %p1308_p6 }
  0x26   : > { %1318 = shalt.err (!%p1315_p12)
}
  0x27   : > { %1193 = dma.hbm_to_vmem [thread:$0]  (!%p1572_p0), %s200_s8, 64, %s203_s10, %s1584_s11  }
  0x28   : > { %p1598_p4 = pnand %p1087_p1, %p226_p2  ;;  %s181_s9 = scalar_lea.hbm %s1781_s0, %s1568_s30 }
  0x29   : > { %s175_s19 = scalar_lea.vmem [#allocation6], %s1565_s29  ;;  %s219_s28 = scalar_lea.hbm %s1783_s2, %s1568_s30 }
  0x2a   : > { %s183_s21 = sshll.u32 %s175_s19, 4  ;;  %s1798_s1 = sand.u32 1, %s1447_s14   ;;  %s184_s21 = int_to_ptr.vmem [resolvable:$true] %s183_s21 }
  0x2b   : > { %s172_s20 = scalar_lea.sflag [#allocation7], %s1798_s1  ;;  %s1332_s8 = scalar_lea.vmem %s184_s21, 64 }
  0x2c   : > { %p1333_p12 = scmp.ne.s32.totalorder %s184_s21, %s1332_s8  ;;  %s1462_s10 = smov [#allocation6]  }
  0x2d   : > { %s1337_s16 = sshll.u32 %s1462_s10, 4  ;;  %s1338_s16 = int_to_ptr.vmem [resolvable:$false] %s1337_s16 }
  0x2e   : > { %p1335_p1 = pnand %p1333_p12, %p1293_p3  ;;  %s1339_s6 = scalar_lea.vmem %s1338_s16, 128 }
  0x2f   : > { %p1340_p5 = scmp.lt.s32.totalorder %s184_s21, %s1338_s16  ;;  %p1341_p6 = scmp.lt.s32.totalorder %s1339_s6, %s1332_s8 }
  0x30   : > { %p1336_p2 = pneg %p1335_p1 }
  0x31   : > { %p1342_p7 = por %p1341_p6, %p1340_p5 }
  0x33   : > { %p1343_p10 = pnand %p1342_p7, %p1336_p2 }
  0x35   : > { %1346 = shalt.err (!%p1343_p10)
}
  0x36   : > { %1190 = dma.hbm_to_vmem [thread:$0]  (!%p1572_p0), %s181_s9, 64, %s184_s21, %s172_s20  }
  0x37   : > { %s213_s1 = scalar_lea.vmem [#allocation11], %s1565_s29  ;;  %s1463_s22 = smov [#allocation11]  }
  0x38   : > { %s221_s7 = sshll.u32 %s213_s1, 4  ;;  %s1365_s16 = sshll.u32 %s1463_s22, 4  ;;  %s222_s7 = int_to_ptr.vmem [resolvable:$true] %s221_s7  ;;  %s1366_s16 = int_to_ptr.vmem [resolvable:$false] %s1365_s16 }
  0x39   : > { %s1360_s19 = scalar_lea.vmem %s222_s7, 64  ;;  %s1367_s23 = scalar_lea.vmem %s1366_s16, 128 }
  0x3a   : > { %p1361_p13 = scmp.ne.s32.totalorder %s222_s7, %s1360_s19  ;;  %p1368_p2 = scmp.lt.s32.totalorder %s222_s7, %s1366_s16 }
  0x3b   : > { %p1369_p5 = scmp.lt.s32.totalorder %s1367_s23, %s1360_s19 }
  0x3c   : > { %p1363_p12 = pnand %p1361_p13, %p1293_p3 }
  0x3d   : > { %p1370_p6 = por %p1369_p5, %p1368_p2 }
  0x3e   : > { %p1364_p1 = pneg %p1363_p12 }
  0x40   : > { %p1371_p7 = pnand %p1370_p6, %p1364_p1 }
  0x42   : > { %1374 = shalt.err (!%p1371_p7)
}
  0x43   : > { %1196 = dma.hbm_to_vmem [thread:$0]  (!%p1572_p0), %s219_s28, 64, %s222_s7, %s1584_s11  }
  0x44   : > { %230 = sbr.rel (%p1598_p4) target bundleno = 1478 (0x5c6), region = 32  ;;  %s1633_s9 = sand.u32 (!%p1598_p4), 1, %s1443_s13  }
  0x45   : > { %s1636_s21 = sshll.u32 (!%p1598_p4), %s1633_s9, 2  ;;  %s233_s4 = scalar_lea.sflag (!%p1598_p4), [#allocation7], %s1633_s9 }
  0x46   : > { %s236_s8 = scalar_lea.vmem (!%p1598_p4), [#allocation6], %s1636_s21 }
  0x49   : > { %1426 = dma.done.wait (%p1545_p8), %s233_s4, 64  }
  0x4a   : > { %1428 = vsyncadd (%p1545_p8), %s233_s4, 4294967232  ;;  %s241_s28 = sand.u32 1, %s1525_s18   ;;  %s245_s11 = scalar_lea.vmem [#allocation9], %s1636_s21 }
  0x4b   : > { %s242_s30 = scalar_lea.sflag [#allocation10], %s241_s28 }
  0x4c   : > { %1430 = dma.done.wait (%p1545_p8), %s242_s30, 128  }
  0x4d   : > { %1432 = vsyncadd (%p1545_p8), %s242_s30, 4294967168  ;;  %vm306_vm0 = vcmask 64512   ;;  %v1464_v0 = vmov 0.0   ;;  %vm1465_vm1 = vmmov 0   ;;  %v311_v1 = vld [vmem:[%s245_s11] sm:$0xf] }
  0x4e   : > { %1131 = vmatprep.subr.bf16.mxu0 %v1464_v0  ;;  %307 = vst.msk [vmem:[#allocation5] sm:$0xff] %vm306_vm0, %v1464_v0  ;;  %308 = vst.msk [vmem:[#allocation5 + $0x8] sm:$0xff] %vm306_vm0, %v1464_v0  ;;  %1133 = vmatprep.mubr.msk.bf16.mxu0 %vm1465_vm1, %v1464_v0  ;;  %v292_v2 = vld [vmem:[%s236_s8] sm:$0xf]  ;;  %v319_v3 = vsel %vm306_vm0, %v311_v1, 0  ;;  %vm296_vm2 = vcmask 257024   ;;  %v1095_v14 = vcombine.low %v311_v1, %v311_v1 }
  0x4f   : > { %309 = vst.msk [vmem:[#allocation5 + $0x10] sm:$0xff] %vm306_vm0, %v1464_v0  ;;  %310 = vst.msk [vmem:[#allocation5 + $0x18] sm:$0xff] %vm306_vm0, %v1464_v0  ;;  %1137 = vmatprep.subr.bf16.mxu1 %v1464_v0  ;;  %1139 = vmatprep.mubr.msk.bf16.mxu1 %vm1465_vm1, %v1464_v0  ;;  %v293_v4 = vunpack.c.l.bf16 %v292_v2  ;;  %v1466_v8 = vmov 0   ;;  %s1467_s18 = smov 120   ;;  %s1468_s24 = smov 112   ;;  %vm395_vm3 = vcmask 1043456  }
  0x50   : > { %1132 = vmatpush3.bf16.xpose.msra.mxu0 %v319_v3  ;;  %1260 = vset.pattern.permute.xlu0 %v1466_v8  ;;  %s1469_s5 = smov 104   ;;  %s254_s10 = scalar_lea.vmem [#allocation11], %s1636_s21  ;;  %vm878_vm4 = vcmask 60416   ;;  %vm896_vm5 = vcmask 126016   ;;  %vm914_vm6 = vcmask 191616   ;;  %vm932_vm7 = vcmask 257216  }
  0x51   : > { %v294_v5 = vmul.f32 0.35355338, %v293_v4  ;;  %1149 = vmatprep.subr.bf16.mxu0 %v1464_v0  ;;  %1261 = vset.pattern.permute.xlu1 %v1466_v8  ;;  %v312_v19 = vld [vmem:[%s254_s10] sm:$0xf]  ;;  %s1726_s6 = scalar_lea.vmem [#allocation12], %s1636_s21  ;;  %s1470_s1 = smov 8  }
  0x52   : > { %451 = vrot.lane.b32.xlu1 %v1095_v14, %s1467_s18  ;;  %v397_v20 = vsel %vm395_vm3, %v312_v19, 0  ;;  %v1097_v57 = vcombine.low %v312_v19, %v312_v19  ;;  %s1471_s7 = smov 16   ;;  %s1472_s19 = smov 24  }
  0x53   : > { %v295_v6 = vpack.c.bf16 %v294_v5, %v294_v5  ;;  %1138 = vmatpush3.bf16.msra.mxu1 %v397_v20  ;;  %s1109_s22 = sshll.u32 %s1451_s15, 6  ;;  %s949_s16 = sshll.u32 %s1726_s6, 4  ;;  %s950_s16 = int_to_ptr.vmem [resolvable:$true] %s949_s16 }
  0x54   : > { %1143 = vmatprep.subr.bf16.mxu1 %v1464_v0  ;;  %s1738_s29 = scalar_lea.hbm %s1784_s3, %s1109_s22  ;;  %s935_s21 = scalar_lea.sflag [#allocation8], %s1633_s9 }
  0x55   : > { %297 = vst.msk [vmem:[#allocation2] sm:$0xf] %vm296_vm2, %v295_v6  ;;  %s1375_s4 = scalar_lea.vmem %s950_s16, 64  ;;  %s1473_s8 = smov [#allocation12]  }
  0x56   : > { %p1376_p8 = scmp.ne.s32.totalorder %s950_s16, %s1375_s4  ;;  %s1379_s28 = sshll.u32 %s1473_s8, 4  ;;  %s1380_s28 = int_to_ptr.vmem [resolvable:$false] %s1379_s28 }
  0x57   : > { %s1381_s15 = scalar_lea.vmem %s1380_s28, 128  ;;  %p1382_p4 = scmp.lt.s32.totalorder %s950_s16, %s1380_s28 }
  0x58   : > { %p1377_p0 = pnand %p1376_p8, %p1549_p9  ;;  %p1383_p10 = scmp.lt.s32.totalorder %s1381_s15, %s1375_s4 }
  0x5a   : > { %p1378_p3 = pneg %p1377_p0  ;;  %p1384_p13 = por %p1383_p10, %p1382_p4 }
  0x5c   : > { %v313_v7 = vld [vmem:[#allocation2] sm:$0xf]  ;;  %p1385_p12 = pnand %p1384_p13, %p1378_p3 }
  0x5d   : > { %1134 = vmatmul.mubr.msk.bf16.vlgmr.msra.gmra.mxu0 %vm306_vm0, %v313_v7  ;;  %v1263_v15 = vld [vmem:[#allocation2] ss:$0 sps:$4 sm:$0xff]  }
  0x5e   : > { %1151 = vmatprep.mubr.msk.bf16.mxu0 %vm1465_vm1, %v1464_v0  ;;  %446 = vrot.lane.b32.xlu1 %v1263_v15, %s1467_s18  ;;  %v1264_v16 = vld [vmem:[#allocation2] ss:$0 sps:$4 sm:$0xff]  }
  0x5f   : > { %v1265_v17 = vld [vmem:[#allocation2] ss:$0 sps:$4 sm:$0xff]  }
  0x62   : > { %593 = vrot.lane.b32.xlu1 %v1095_v14, %s1468_s24 }
  0x66   : > { %591 = vrot.lane.b32.xlu1 %v1264_v16, %s1468_s24 }
  0x6a   : > { %732 = vrot.lane.b32.xlu1 %v1095_v14, %s1469_s5 }
  0x6e   : > { %730 = vrot.lane.b32.xlu1 %v1265_v17, %s1469_s5 }
  0xc4   : > { %v452_v24 = vpop.permute.xlu1 %451 }
  0xc5   : > { %v457_v27 = vsel %vm306_vm0, %v452_v24, 0 }
  0xd0   : > { %v447_v25 = vpop.permute.xlu1 %446 }
  0xd4   : > { %v594_v29 = vpop.permute.xlu1 %593 }
  0xd5   : > { %v599_v31 = vsel %vm306_vm0, %v594_v29, 0 }
  0xd8   : > { %v592_v30 = vpop.permute.xlu1 %591 }
  0xdc   : > { %v733_v32 = vpop.permute.xlu1 %732 }
  0xdd   : > { %v738_v33 = vsel %vm306_vm0, %v733_v32, 0 }
  0xe0   : > { %v731_v34 = vpop.permute.xlu1 %730 }
 0x11d   : > { %v355_v9 = vpop.f32.mrf.mxu0 }
 0x11e   : > { %v362_v10 = vsel %vm306_vm0, %v355_v9, -inf }
 0x11f   : > { %363 = vmax.xlane.f32.xlu0 %v362_v10  ;;  %v1135_v11 = vpop.f32.mrf.mxu0 }
 0x121   : > { %v358_v12 = vpop.f32.mrf.mxu0 }
 0x123   : > { %v1136_v13 = vpop.f32.mrf.mxu0 }
 0x1a8   : > { %v1676_v18 = vpop.xlane.xlu0 %363 }
 0x1a9   : > { %371 = vperm.xlu0 %1260, %v1676_v18   ;;  %v366_v24 = vsub.f32 -inf, %v1676_v18 }
 0x224   : > { %v372_v21 = vpop.permute.xlu0 %371 }
 0x225   : > { %v374_v22 = vsub.f32 %v355_v9, %v372_v21 }
 0x227   : > { %v375_v23 = vmul.f32 1.442695, %v374_v22 }
 0x229   : > { %1267 = vpow2.f32 %v375_v23 }
 0x236   : > { %v1268_v26 = vpop.eup %1267 }
 0x237   : > { %v391_v28 = vpack.c.bf16 %v1268_v26, %v1268_v26  ;;  %v379_v58 = vsel %vm306_vm0, %v1268_v26, 0.0  ;;  %v367_v26 = vmul.f32 1.442695, %v366_v24 }
 0x239   : > { %1140 = vmatmul.mubr.msk.bf16.vlgmr.msra.gmra.mxu1 %vm306_vm0, %v391_v28 }
 0x23a   : > { %1144 = vmatpush3.bf16.xpose.msra.mxu1 %v457_v27  ;;  %1145 = vmatprep.mubr.msk.bf16.mxu1 %vm1465_vm1, %v1464_v0 }
 0x23b   : > { %1155 = vmatprep.subr.bf16.mxu1 %v1464_v0 }
 0x241   : > { %1146 = vmatmul.mubr.msk.bf16.vlgmr.msra.gmra.mxu1 %vm306_vm0, %v447_v25 }
 0x242   : > { %1156 = vmatpush3.bf16.xpose.msra.mxu1 %v599_v31  ;;  %1157 = vmatprep.mubr.msk.bf16.mxu1 %vm1465_vm1, %v1464_v0 }
 0x243   : > { %1167 = vmatprep.subr.bf16.mxu1 %v1464_v0 }
 0x249   : > { %1158 = vmatmul.mubr.msk.bf16.vlgmr.msra.gmra.mxu1 %vm306_vm0, %v592_v30 }
 0x24a   : > { %1168 = vmatpush3.bf16.xpose.msra.mxu1 %v738_v33  ;;  %1169 = vmatprep.mubr.msk.bf16.mxu1 %vm1465_vm1, %v1464_v0 }
 0x251   : > { %1170 = vmatmul.mubr.msk.bf16.vlgmr.msra.gmra.mxu1 %vm306_vm0, %v731_v34 }
 0x2f9   : > { %v1697_v35 = vpop.f32.mrf.mxu1 }
 0x2fb   : > { %v1141_v36 = vpop.f32.mrf.mxu1 }
 0x2fd   : > { %v436_v37 = vpop.f32.mrf.mxu1 }
 0x2ff   : > { %v1142_v38 = vpop.f32.mrf.mxu1 }
 0x301   : > { %v493_v39 = vpop.f32.mrf.mxu1 }
 0x302   : > { %v501_v40 = vsel %vm306_vm0, %v493_v39, -inf }
 0x303   : > { %502 = vmax.xlane.f32.xlu1 %v501_v40  ;;  %v1147_v41 = vpop.f32.mrf.mxu1 }
 0x305   : > { %v496_v42 = vpop.f32.mrf.mxu1 }
 0x307   : > { %v1148_v43 = vpop.f32.mrf.mxu1 }
 0x309   : > { %v635_v44 = vpop.f32.mrf.mxu1 }
 0x30a   : > { %v643_v45 = vsel %vm306_vm0, %v635_v44, -inf }
 0x30b   : > { %644 = vmax.xlane.f32.xlu0 %v643_v45  ;;  %v1159_v46 = vpop.f32.mrf.mxu1 }
 0x30c   : > { %v384_v46 = vld [vmem:[#allocation5] sm:$0xff] }
 0x30d   : > { %v638_v47 = vpop.f32.mrf.mxu1 }
 0x30f   : > { %v1160_v48 = vpop.f32.mrf.mxu1 }
 0x311   : > { %v774_v49 = vpop.f32.mrf.mxu1 }
 0x312   : > { %v782_v50 = vsel %vm306_vm0, %v774_v49, -inf }
 0x313   : > { %783 = vmax.xlane.f32.xlu1 %v782_v50  ;;  %v1171_v51 = vpop.f32.mrf.mxu1 }
 0x315   : > { %v777_v52 = vpop.f32.mrf.mxu1 }
 0x317   : > { %v1172_v53 = vpop.f32.mrf.mxu1 }
 0x318   : > { %v525_v53 = vld [vmem:[#allocation5 + $0x8] sm:$0xff] }
 0x38c   : > { %v503_v54 = vpop.xlane.xlu1 %502 }
 0x38d   : > { %510 = vperm.xlu1 %1261, %v503_v54   ;;  %v505_v9 = vsub.f32 -inf, %v503_v54 }
 0x38f   : > { %v506_v14 = vmul.f32 1.442695, %v505_v9 }
 0x394   : > { %v645_v55 = vpop.xlane.xlu0 %644 }
 0x395   : > { %652 = vperm.xlu0 %1260, %v645_v55   ;;  %v647_v27 = vsub.f32 -inf, %v645_v55 }
 0x397   : > { %v648_v29 = vmul.f32 1.442695, %v647_v27 }
 0x39c   : > { %v784_v56 = vpop.xlane.xlu1 %783 }
 0x39d   : > { %791 = vperm.xlu1 %1261, %v784_v56   ;;  %v786_v15 = vsub.f32 -inf, %v784_v56 }
 0x39f   : > { %v787_v19 = vmul.f32 1.442695, %v786_v15 }
 0x3a1   : > { %536 = vrot.lane.b32.xlu1 %v1097_v57, %s1467_s18 }
 0x3a5   : > { %675 = vrot.lane.b32.xlu1 %v1097_v57, %s1468_s24 }
 0x3a9   : > { %814 = vrot.lane.b32.xlu1 %v1097_v57, %s1469_s5 }
 0x3cd   : > { %380 = vadd.xlane.f32.xlu1 %v379_v58 }
 0x408   : > { %v511_v59 = vpop.permute.xlu1 %510 }
 0x409   : > { %v513_v60 = vsub.f32 %v493_v39, %v511_v59 }
 0x40b   : > { %v514_v61 = vmul.f32 1.442695, %v513_v60 }
 0x40d   : > { %1269 = vpow2.f32 %v514_v61 }
 0x410   : > { %v653_v62 = vpop.permute.xlu0 %652 }
 0x411   : > { %v655_v63 = vsub.f32 %v635_v44, %v653_v62  ;;  %v667_v62 = vld [vmem:[#allocation5 + $0x10] sm:$0xff] }
 0x413   : > { %v656_v1 = vmul.f32 1.442695, %v655_v63 }
 0x415   : > { %1271 = vpow2.f32 %v656_v1 }
 0x418   : > { %v792_v2 = vpop.permute.xlu1 %791 }
 0x419   : > { %v794_v3 = vsub.f32 %v774_v49, %v792_v2 }
 0x41a   : > { %v1270_v4 = vpop.eup %1269 }
 0x41b   : > { %v795_v5 = vmul.f32 1.442695, %v794_v3  ;;  %v519_v6 = vsel %vm306_vm0, %v1270_v4, 0.0  ;;  %v532_v10 = vpack.c.bf16 %v1270_v4, %v1270_v4 }
 0x41c   : > { %520 = vadd.xlane.f32.xlu0 %v519_v6  ;;  %v537_v7 = vpop.permute.xlu1 %536 }
 0x41d   : > { %1273 = vpow2.f32 %v795_v5  ;;  %v542_v8 = vsel %vm395_vm3, %v537_v7, 0  ;;  %v806_v7 = vld [vmem:[#allocation5 + $0x18] sm:$0xff] }
 0x41e   : > { %1150 = vmatpush3.bf16.msra.mxu0 %v542_v8  ;;  %1275 = vpow2.f32 %v506_v14 }
 0x41f   : > { %1161 = vmatprep.subr.bf16.mxu0 %v1464_v0  ;;  %1277 = vpow2.f32 %v787_v19 }
 0x420   : > { %v676_v11 = vpop.permute.xlu1 %675  ;;  %1279 = vpow2.f32 %v367_v26 }
 0x421   : > { %1152 = vmatmul.mubr.msk.bf16.vlgmr.msra.gmra.mxu0 %vm306_vm0, %v532_v10  ;;  %v681_v12 = vsel %vm395_vm3, %v676_v11, 0  ;;  %1281 = vpow2.f32 %v648_v29 }
 0x422   : > { %v1272_v13 = vpop.eup %1271  ;;  %1162 = vmatpush3.bf16.msra.mxu0 %v681_v12  ;;  %1163 = vmatprep.mubr.msk.bf16.mxu0 %vm1465_vm1, %v1464_v0 }
 0x423   : > { %v661_v16 = vsel %vm306_vm0, %v1272_v13, 0.0  ;;  %1173 = vmatprep.subr.bf16.mxu0 %v1464_v0  ;;  %v674_v20 = vpack.c.bf16 %v1272_v13, %v1272_v13 }
 0x424   : > { %662 = vadd.xlane.f32.xlu1 %v661_v16  ;;  %v815_v17 = vpop.permute.xlu1 %814 }
 0x425   : > { %v820_v21 = vsel %vm395_vm3, %v815_v17, 0 }
 0x429   : > { %1164 = vmatmul.mubr.msk.bf16.vlgmr.msra.gmra.mxu0 %vm306_vm0, %v674_v20 }
 0x42a   : > { %v1274_v22 = vpop.eup %1273  ;;  %1174 = vmatpush3.bf16.msra.mxu0 %v820_v21  ;;  %1175 = vmatprep.mubr.msk.bf16.mxu0 %vm1465_vm1, %v1464_v0 }
 0x42b   : > { %v800_v23 = vsel %vm306_vm0, %v1274_v22, 0.0  ;;  %v813_v25 = vpack.c.bf16 %v1274_v22, %v1274_v22  ;;  %v1276_v28 = vpop.eup %1275 }
 0x42c   : > { %801 = vadd.xlane.f32.xlu0 %v800_v23  ;;  %v1278_v30 = vpop.eup %1277  ;;  %v518_v36 = vmul.f32 0.0, %v1276_v28 }
 0x42d   : > { %v1280_v31 = vpop.eup %1279  ;;  %v799_v42 = vmul.f32 0.0, %v1278_v30 }
 0x42e   : > { %v1282_v0 = vpop.eup %1281  ;;  %v378_v32 = vmul.f32 0.0, %v1280_v31 }
 0x42f   : > { %v660_v39 = vmul.f32 0.0, %v1282_v0 }
 0x431   : > { %1176 = vmatmul.mubr.msk.bf16.vlgmr.msra.gmra.mxu0 %vm306_vm0, %v813_v25 }
 0x435   : > { %528 = vperm.xlu1 %1261, %v1276_v28  }
 0x439   : > { %809 = vperm.xlu1 %1261, %v1278_v30  }
 0x442   : > { %387 = vperm.xlu0 %1260, %v1280_v31  }
 0x446   : > { %670 = vperm.xlu0 %1260, %v1282_v0  }
 0x456   : > { %v381_v33 = vpop.xlane.xlu1 %380 }
 0x457   : > { %v382_v18 = vadd.f32 %v381_v33, %v378_v32 }
 0x459   : > { %1283 = vrcp.f32 %v382_v18 }
 0x466   : > { %v1284_v34 = vpop.eup %1283 }
 0x467   : > { %873 = vperm.xlu1 %1261, %v1284_v34  }
 0x4a5   : > { %v521_v37 = vpop.xlane.xlu0 %520 }
 0x4a6   : > { %v522_v38 = vadd.f32 %v521_v37, %v518_v36 }
 0x4a8   : > { %1285 = vrcp.f32 %v522_v38 }
 0x4ad   : > { %v663_v40 = vpop.xlane.xlu1 %662 }
 0x4ae   : > { %v664_v41 = vadd.f32 %v663_v40, %v660_v39 }
 0x4b0   : > { %1287 = vrcp.f32 %v664_v41 }
 0x4b1   : > { %v529_v52 = vpop.permute.xlu1 %528 }
 0x4b2   : > { %v531_v55 = vmul.f32 %v529_v52, %v525_v53 }
 0x4b5   : > { %v1286_v43 = vpop.eup %1285  ;;  %v802_v44 = vpop.xlane.xlu0 %801 }
 0x4b6   : > { %v803_v45 = vadd.f32 %v802_v44, %v799_v42  ;;  %885 = vperm.xlu0 %1260, %v1286_v43   ;;  %v810_v54 = vpop.permute.xlu1 %809 }
 0x4b7   : > { %v812_v10 = vmul.f32 %v810_v54, %v806_v7 }
 0x4b8   : > { %1289 = vrcp.f32 %v803_v45 }
 0x4bd   : > { %v1288_v47 = vpop.eup %1287  ;;  %v388_v48 = vpop.permute.xlu0 %387 }
 0x4be   : > { %v390_v49 = vmul.f32 %v388_v48, %v384_v46  ;;  %903 = vperm.xlu0 %1260, %v1288_v47  }
 0x4c0   : > { %v439_v50 = vadd.f32 %v1697_v35, %v390_v49 }
 0x4c1   : > { %v671_v35 = vpop.permute.xlu0 %670 }
 0x4c2   : > { %440 = vst.msk [vmem:[#allocation5] sm:$0xff] %vm306_vm0, %v439_v50  ;;  %v673_v3 = vmul.f32 %v671_v35, %v667_v62 }
 0x4c5   : > { %v1290_v51 = vpop.eup %1289 }
 0x4c6   : > { %921 = vperm.xlu0 %1260, %v1290_v51  }
 0x4c9   : > { %v869_v58 = vld [vmem:[#allocation5] sm:$0xff] }
 0x4e1   : > { %v578_v56 = vpop.f32.mrf.mxu0 }
 0x4e2   : > { %v584_v57 = vadd.f32 %v578_v56, %v531_v55  ;;  %v874_v59 = vpop.permute.xlu1 %873 }
 0x4e3   : > { %v876_v60 = vmul.f32 %v874_v59, %v869_v58  ;;  %v1153_v61 = vpop.f32.mrf.mxu0 }
 0x4e4   : > { %585 = vst.msk [vmem:[#allocation5 + $0x8] sm:$0xff] %vm306_vm0, %v584_v57 }
 0x4e5   : > { %v877_v63 = vpack.c.bf16 %v876_v60, %v876_v60  ;;  %v581_v1 = vpop.f32.mrf.mxu0 }
 0x4e7   : > { %879 = vst.msk [vmem:[%s1726_s6] sm:$0xf] %vm878_vm4, %v877_v63  ;;  %v1154_v2 = vpop.f32.mrf.mxu0 }
 0x4e9   : > { %v717_v4 = vpop.f32.mrf.mxu0 }
 0x4ea   : > { %v723_v5 = vadd.f32 %v717_v4, %v673_v3 }
 0x4eb   : > { %v1165_v6 = vpop.f32.mrf.mxu0  ;;  %v881_v17 = vld [vmem:[#allocation5 + $0x8] sm:$0xff] }
 0x4ec   : > { %724 = vst.msk [vmem:[#allocation5 + $0x10] sm:$0xff] %vm306_vm0, %v723_v5 }
 0x4ed   : > { %v720_v8 = vpop.f32.mrf.mxu0 }
 0x4ef   : > { %v1166_v9 = vpop.f32.mrf.mxu0 }
 0x4f1   : > { %v856_v11 = vpop.f32.mrf.mxu0 }
 0x4f2   : > { %v862_v12 = vadd.f32 %v856_v11, %v812_v10 }
 0x4f3   : > { %v1177_v13 = vpop.f32.mrf.mxu0  ;;  %v899_v22 = vld [vmem:[#allocation5 + $0x10] sm:$0xff] }
 0x4f4   : > { %863 = vst.msk [vmem:[#allocation5 + $0x18] sm:$0xff] %vm306_vm0, %v862_v12 }
 0x4f5   : > { %v859_v14 = vpop.f32.mrf.mxu0 }
 0x4f7   : > { %v1178_v15 = vpop.f32.mrf.mxu0 }
 0x4fb   : > { %v917_v26 = vld [vmem:[#allocation5 + $0x18] sm:$0xff] }
 0x531   : > { %v886_v16 = vpop.permute.xlu0 %885 }
 0x532   : > { %v888_v19 = vmul.f32 %v886_v16, %v881_v17 }
 0x534   : > { %v1112_v20 = vpack.c.bf16 %v888_v19, %v888_v19 }
 0x536   : > { %893 = vrot.lane.b32.xlu1 %v1112_v20, %s1470_s1 }
 0x539   : > { %v904_v21 = vpop.permute.xlu0 %903 }
 0x53a   : > { %v906_v23 = vmul.f32 %v904_v21, %v899_v22 }
 0x53c   : > { %v1113_v24 = vpack.c.bf16 %v906_v23, %v906_v23 }
 0x53e   : > { %911 = vrot.lane.b32.xlu1 %v1113_v24, %s1471_s7 }
 0x541   : > { %v922_v25 = vpop.permute.xlu0 %921 }
 0x542   : > { %v924_v27 = vmul.f32 %v922_v25, %v917_v26 }
 0x544   : > { %v1114_v28 = vpack.c.bf16 %v924_v27, %v924_v27 }
 0x546   : > { %929 = vrot.lane.b32.xlu1 %v1114_v28, %s1472_s19 }
 0x5a8   : > { %v894_v29 = vpop.permute.xlu1 %893 }
 0x5a9   : > { %897 = vst.msk [vmem:[%s1726_s6] sm:$0xf] %vm896_vm5, %v894_v29 }
 0x5b0   : > { %v912_v30 = vpop.permute.xlu1 %911 }
 0x5b1   : > { %915 = vst.msk [vmem:[%s1726_s6] sm:$0xf] %vm914_vm6, %v912_v30 }
 0x5b8   : > { %v930_v31 = vpop.permute.xlu1 %929 }
 0x5b9   : > { %933 = vst.msk [vmem:[%s1726_s6] sm:$0xf] %vm932_vm7, %v930_v31 }
 0x5ba   : > { %1388 = shalt.err (!%p1385_p12)
}
 0x5bb   : > { %s1389_s30 = scalar_lea.hbm %s1738_s29, 64  ;;  %s1393_s18 = scalar_lea.hbm %s1784_s3, 128 }
 0x5bc   : > { %p1390_p1 = scmp.ne.s32.totalorder %s1738_s29, %s1389_s30  ;;  %p1394_p6 = scmp.lt.s32.totalorder %s1738_s29, %s1784_s3 }
 0x5bd   : > { %p1395_p7 = scmp.lt.s32.totalorder %s1393_s18, %s1389_s30 }
 0x5be   : > { %p1391_p2 = pnand %p1390_p1, %p1549_p9 }
 0x5bf   : > { %p1396_p8 = por %p1395_p7, %p1394_p6 }
 0x5c0   : > { %p1392_p5 = pneg %p1391_p2 }
 0x5c2   : > { %p1397_p0 = pnand %p1396_p8, %p1392_p5 }
 0x5c4   : > { %1400 = shalt.err (!%p1397_p0)
}
 0x5c5   : > { %1185 = dma.vmem_to_hbm [thread:$0]  (%p1549_p9), %s950_s16, 64, %s1738_s29, %s935_s21  }
 0x5c6 PF: > { %s961_s10 = sand.u32 1, %s1439_s12   ;;  %p1799_p3 = scmp.ge.s32.totalorder %s1459_s17, 2 }
 0x5c7   : > { %s962_s6 = scalar_lea.sflag [#allocation8], %s961_s10 }
 0x5c8   : > { %p1198_p4 = pnand %p1799_p3, %p1556_p11 }
 0x5ca   : > { %p1199_p10 = pneg %p1198_p4 }
 0x5cc   : > { %1434 = dma.done.wait (%p1199_p10), %s962_s6, 64  }
 0x5cd   : > { %1436 = vsyncadd (%p1199_p10), %s962_s6, 4294967232  ;;  %s22_s17 = sadd.s32 1, %s1459_s17   ;;  %s1800_s15 = sld [smem:[#allocation16_spill]] }
 0x5ce   : > { %p19_p13 = scmp.ge.s32.totalorder %s22_s17, 4   ;;  %s1801_s16 = sld [smem:[#allocation17_spill]] }
 0x5cf   : > { %s1802_s12 = smov %s1443_s13  ;;  %s1803_s13 = smov %s1447_s14 }
 0x5d0   : > { %s1804_s14 = smov %s1554_s26  ;;  %21 = sbr.rel (!%p19_p13) target bundleno = 10 (0xa), region = 118 }
 0x5d5   :  { %967 = vsyncpa [#allocation7], 1 }
 0x5d6   :  { %969 = vsyncpa [#allocation7 + $0x1], 1 }
 0x5d7   :  { %970 = vsyncpa [#allocation10], 1 }
 0x5d8   :  { %972 = vsyncpa [#allocation10 + $0x1], 1 }
 0x5d9   :  { %973 = vsyncpa [#allocation8], 1 }
 0x5da   :  { %975 = vsyncpa [#allocation8 + $0x1], 1 }

</bundles_post_ra>
